<compile_context>
chip_gen: v7x
topology: tpu7x:2x2x1
jax: 0.10.0
libtpu: 0.0.40
codegen_flags: <defaults>
</compile_context>

<pallas_src>
import functools

import jax
import jax.numpy as jnp
import numpy as np
from jax.experimental import pallas as pl
from jax.experimental.pallas import tpu as pltpu

BP = 8  # batch padded to one sublane group


def lstm_kernel(x_ref, wih_ref, whh_ref, b_ref, o_ref, *, seq):
    """Whole LSTM recurrence in one invocation (PyTorch gate order i, f, g, o).

    x_ref  : (seq*BP, D)  time-major flattened embeddings, batch padded to BP
    wih_ref: (D, 4H)      W_ih^T
    whh_ref: (H, 4H)      W_hh^T
    b_ref  : (1, 4H)      b_ih + b_hh
    o_ref  : (BP, H)      hidden state at the last timestep (padded rows junk)
    """
    H = whh_ref.shape[0]

    # One MXU push projects the inputs of ALL timesteps; bias added once.
    xw = jnp.dot(x_ref[...], wih_ref[...], preferred_element_type=jnp.float32)
    xw = xw + b_ref[...]                          # (seq*BP, 4H)

    whh = whh_ref[...]
    h = jnp.full((BP, H), 0.5, jnp.float32)       # h0 = 0.5 (as in the reference)
    c = jnp.full((BP, H), 0.5, jnp.float32)       # c0 = 0.5

    # Fully unrolled serial recurrence; only one tiny matmul per step remains on
    # the critical path. Each xw slice is one full (8,128) vreg tile (static
    # offsets, tile-aligned -> no sublane shuffles).
    for t in range(seq):
        gates = xw[t * BP:(t + 1) * BP, :] + jnp.dot(
            h, whh, preferred_element_type=jnp.float32)   # (BP, 4H)

        act = jax.nn.sigmoid(gates)               # one EUP pass over the full vreg
        i_g = act[:, 0 * H:1 * H]
        f_g = act[:, 1 * H:2 * H]
        o_g = act[:, 3 * H:4 * H]
        g_g = jnp.tanh(gates[:, 2 * H:3 * H])

        c = f_g * c + i_g * g_g
        h = o_g * jnp.tanh(c)

    # Single, unmasked full-tile store of the final hidden state.
    o_ref[...] = h.astype(o_ref.dtype)


def lstm_last_hidden(x_flat, w_ih_t, w_hh_t, bias, *, seq):
    """x_flat: (seq*BP, D) time-major, batch-padded embeddings. Returns (BP, H)."""
    SB, D = x_flat.shape
    H = w_hh_t.shape[0]
    assert SB == seq * BP
    assert w_ih_t.shape == (D, 4 * H)
    assert w_hh_t.shape == (H, 4 * H)
    assert bias.shape == (1, 4 * H)

    return pl.pallas_call(
        functools.partial(lstm_kernel, seq=seq),
        out_shape=jax.ShapeDtypeStruct((BP, H), jnp.float32),
        grid_spec=pltpu.PrefetchScalarGridSpec(
            num_scalar_prefetch=0,
            grid=(1,),                                        # single invocation
            in_specs=[
                pl.BlockSpec((SB, D), lambda i: (0, 0)),      # x (all timesteps)
                pl.BlockSpec((D, 4 * H), lambda i: (0, 0)),   # W_ih^T
                pl.BlockSpec((H, 4 * H), lambda i: (0, 0)),   # W_hh^T
                pl.BlockSpec((1, 4 * H), lambda i: (0, 0)),   # bias
            ],
            out_specs=pl.BlockSpec((BP, H), lambda i: (0, 0)),
        ),
        compiler_params=pltpu.CompilerParams(
            dimension_semantics=("arbitrary",),
        ),
    )(x_flat, w_ih_t, w_hh_t, bias)


@jax.jit
def net_forward(x_ids, emb_table, w_ih, w_hh, b_ih, b_hh):
    """Replicates net.forward: embedding -> LSTM(h0=c0=0.5) -> last timestep."""
    B, S = x_ids.shape
    D = emb_table.shape[1]
    # Time-major ids, batch padded to a full sublane group with id 0
    # (padded rows only produce dead lanes that are sliced off below).
    ids_tm = jnp.zeros((S, BP), jnp.int32).at[:, :B].set(x_ids.T)
    # Gather embeddings directly in time-major order: (S, BP, D).
    x_tm = jnp.take(emb_table, ids_tm, axis=0)
    x_flat = x_tm.reshape(S * BP, D)              # free row-major view
    # PyTorch stores W_ih as (4H, D), W_hh as (4H, H); kernel wants transposes.
    w_ih_t = w_ih.T
    w_hh_t = w_hh.T
    bias = (b_ih + b_hh)[None, :]
    out_pad = lstm_last_hidden(x_flat, w_ih_t, w_hh_t, bias, seq=S)
    return out_pad[:B]                             # drop padded batch rows


def lstm_ref(x_ids, emb_table, w_ih, w_hh, b_ih, b_hh):
    """Pure-JAX reference of the PyTorch forward (for a correctness check)."""
    x = jnp.take(emb_table, x_ids, axis=0)         # (B, S, D)
    B, S, _ = x.shape
    H = w_hh.shape[1]
    h = jnp.full((B, H), 0.5, jnp.float32)
    c = jnp.full((B, H), 0.5, jnp.float32)
    for t in range(S):
        gates = x[:, t, :] @ w_ih.T + h @ w_hh.T + b_ih + b_hh
        i = jax.nn.sigmoid(gates[:, 0 * H:1 * H])
        f = jax.nn.sigmoid(gates[:, 1 * H:2 * H])
        g = jnp.tanh(gates[:, 2 * H:3 * H])
        o = jax.nn.sigmoid(gates[:, 3 * H:4 * H])
        c = f * c + i * g
        h = o * jnp.tanh(c)
    return h


if __name__ == "__main__":
    # Small, module-consistent shapes.
    batch_size = 2
    seq_len = 8
    input_size = 32
    hidden_size = 32
    vocab_size = 125084 + 1

    key = jax.random.PRNGKey(0)
    k_emb, k_wih, k_whh, k_bih, k_bhh, k_ids = jax.random.split(key, 6)

    # Deterministic parameter init (shapes as in nn.Embedding / nn.LSTM).
    emb_table = jax.random.normal(k_emb, (vocab_size, input_size), jnp.float32)
    emb_table = emb_table.at[0].set(0.0)  # padding_idx=0

    bound = 1.0 / jnp.sqrt(hidden_size)
    w_ih = jax.random.uniform(k_wih, (4 * hidden_size, input_size),
                              jnp.float32, -bound, bound)
    w_hh = jax.random.uniform(k_whh, (4 * hidden_size, hidden_size),
                              jnp.float32, -bound, bound)
    b_ih = jax.random.uniform(k_bih, (4 * hidden_size,), jnp.float32, -bound, bound)
    b_hh = jax.random.uniform(k_bhh, (4 * hidden_size,), jnp.float32, -bound, bound)

    x_ids = jax.random.randint(k_ids, (batch_size, seq_len), 0, vocab_size,
                               dtype=jnp.int32)

    out = net_forward(x_ids, emb_table, w_ih, w_hh, b_ih, b_hh)
    out = jax.block_until_ready(out)
    assert out.shape == (batch_size, hidden_size), out.shape

    ref = jax.block_until_ready(lstm_ref(x_ids, emb_table, w_ih, w_hh, b_ih, b_hh))
    np.testing.assert_allclose(np.asarray(out), np.asarray(ref),
                               rtol=1e-4, atol=1e-5)
    print("KERNEL_OK")
</pallas_src>

<mosaic_0001>
module attributes {stable_mosaic.version = 11 : i64} {
  func.func @lstm_kernel(%arg0: i32, %arg1: memref<64x32xf32, #tpu.memory_space<vmem>>, %arg2: memref<32x128xf32, #tpu.memory_space<vmem>>, %arg3: memref<32x128xf32, #tpu.memory_space<vmem>>, %arg4: memref<1x128xf32, #tpu.memory_space<vmem>>, %arg5: memref<8x32xf32, #tpu.memory_space<vmem>>) attributes {dimension_semantics = [#tpu.dimension_semantics<arbitrary>], iteration_bounds = array<i64: 1>, scalar_prefetch = 0 : i64, scratch_operands = 0 : i64, tpu.core_type = #tpu.core_type<tc>, window_params = [{pipeline_mode = #tpu.pipeline_mode<synchronous>, transform_indices = @transform_0, window_bounds = array<i64: 64, 32>}, {pipeline_mode = #tpu.pipeline_mode<synchronous>, transform_indices = @transform_1, window_bounds = array<i64: 32, 128>}, {pipeline_mode = #tpu.pipeline_mode<synchronous>, transform_indices = @transform_2, window_bounds = array<i64: 32, 128>}, {pipeline_mode = #tpu.pipeline_mode<synchronous>, transform_indices = @transform_3, window_bounds = array<i64: 1, 128>}, {pipeline_mode = #tpu.pipeline_mode<synchronous>, transform_indices = @transform_4, window_bounds = array<i64: 8, 32>}]} {
    %c0 = arith.constant 0 : index
    %c0_0 = arith.constant 0 : index
    %0 = vector.load %arg1[%c0, %c0_0] : memref<64x32xf32, #tpu.memory_space<vmem>>, vector<64x32xf32>
    %c0_1 = arith.constant 0 : index
    %c0_2 = arith.constant 0 : index
    %1 = vector.load %arg2[%c0_1, %c0_2] : memref<32x128xf32, #tpu.memory_space<vmem>>, vector<32x128xf32>
    %cst = arith.constant dense<0.000000e+00> : vector<64x128xf32>
    %2 = tpu.matmul %0, %1, %cst {dimension_numbers = #tpu.dot_dimension_numbers<[1], [0], [0], [1], [0, 0, 1, 1], [], []>} : vector<64x32xf32>, vector<32x128xf32>, vector<64x128xf32> -> vector<64x128xf32>
    %c0_3 = arith.constant 0 : index
    %c0_4 = arith.constant 0 : index
    %3 = vector.load %arg4[%c0_3, %c0_4] : memref<1x128xf32, #tpu.memory_space<vmem>>, vector<1x128xf32>
    %4 = vector.broadcast %3 : vector<1x128xf32> to vector<64x128xf32>
    %5 = arith.addf %2, %4 : vector<64x128xf32>
    %c0_5 = arith.constant 0 : index
    %c0_6 = arith.constant 0 : index
    %6 = vector.load %arg3[%c0_5, %c0_6] : memref<32x128xf32, #tpu.memory_space<vmem>>, vector<32x128xf32>
    %cst_7 = arith.constant 5.000000e-01 : f32
    %7 = vector.broadcast %cst_7 : f32 to vector<8x32xf32>
    %cst_8 = arith.constant 5.000000e-01 : f32
    %8 = vector.broadcast %cst_8 : f32 to vector<8x32xf32>
    %9 = vector.extract_strided_slice %5 {offsets = [0, 0], sizes = [8, 128], strides = [1, 1]} : vector<64x128xf32> to vector<8x128xf32>
    %cst_9 = arith.constant dense<0.000000e+00> : vector<8x128xf32>
    %10 = tpu.matmul %7, %6, %cst_9 {dimension_numbers = #tpu.dot_dimension_numbers<[1], [0], [0], [1], [0, 0, 1, 1], [], []>} : vector<8x32xf32>, vector<32x128xf32>, vector<8x128xf32> -> vector<8x128xf32>
    %11 = arith.addf %9, %10 : vector<8x128xf32>
    %12 = arith.negf %11 : vector<8x128xf32>
    %13 = math.exp %12 : vector<8x128xf32>
    %cst_10 = arith.constant 1.000000e+00 : f32
    %14 = vector.broadcast %cst_10 : f32 to vector<8x128xf32>
    %15 = arith.addf %14, %13 : vector<8x128xf32>
    %16 = arith.divf %14, %15 : vector<8x128xf32>
    %17 = vector.extract_strided_slice %16 {offsets = [0, 0], sizes = [8, 32], strides = [1, 1]} : vector<8x128xf32> to vector<8x32xf32>
    %18 = vector.extract_strided_slice %16 {offsets = [0, 32], sizes = [8, 32], strides = [1, 1]} : vector<8x128xf32> to vector<8x32xf32>
    %19 = vector.extract_strided_slice %16 {offsets = [0, 96], sizes = [8, 32], strides = [1, 1]} : vector<8x128xf32> to vector<8x32xf32>
    %20 = vector.extract_strided_slice %11 {offsets = [0, 64], sizes = [8, 32], strides = [1, 1]} : vector<8x128xf32> to vector<8x32xf32>
    %21 = math.tanh %20 : vector<8x32xf32>
    %22 = arith.mulf %18, %8 : vector<8x32xf32>
    %23 = arith.mulf %17, %21 : vector<8x32xf32>
    %24 = arith.addf %22, %23 : vector<8x32xf32>
    %25 = math.tanh %24 : vector<8x32xf32>
    %26 = arith.mulf %19, %25 : vector<8x32xf32>
    %27 = vector.extract_strided_slice %5 {offsets = [8, 0], sizes = [8, 128], strides = [1, 1]} : vector<64x128xf32> to vector<8x128xf32>
    %cst_11 = arith.constant dense<0.000000e+00> : vector<8x128xf32>
    %28 = tpu.matmul %26, %6, %cst_11 {dimension_numbers = #tpu.dot_dimension_numbers<[1], [0], [0], [1], [0, 0, 1, 1], [], []>} : vector<8x32xf32>, vector<32x128xf32>, vector<8x128xf32> -> vector<8x128xf32>
    %29 = arith.addf %27, %28 : vector<8x128xf32>
    %30 = arith.negf %29 : vector<8x128xf32>
    %31 = math.exp %30 : vector<8x128xf32>
    %cst_12 = arith.constant 1.000000e+00 : f32
    %32 = vector.broadcast %cst_12 : f32 to vector<8x128xf32>
    %33 = arith.addf %32, %31 : vector<8x128xf32>
    %34 = arith.divf %32, %33 : vector<8x128xf32>
    %35 = vector.extract_strided_slice %34 {offsets = [0, 0], sizes = [8, 32], strides = [1, 1]} : vector<8x128xf32> to vector<8x32xf32>
    %36 = vector.extract_strided_slice %34 {offsets = [0, 32], sizes = [8, 32], strides = [1, 1]} : vector<8x128xf32> to vector<8x32xf32>
    %37 = vector.extract_strided_slice %34 {offsets = [0, 96], sizes = [8, 32], strides = [1, 1]} : vector<8x128xf32> to vector<8x32xf32>
    %38 = vector.extract_strided_slice %29 {offsets = [0, 64], sizes = [8, 32], strides = [1, 1]} : vector<8x128xf32> to vector<8x32xf32>
    %39 = math.tanh %38 : vector<8x32xf32>
    %40 = arith.mulf %36, %24 : vector<8x32xf32>
    %41 = arith.mulf %35, %39 : vector<8x32xf32>
    %42 = arith.addf %40, %41 : vector<8x32xf32>
    %43 = math.tanh %42 : vector<8x32xf32>
    %44 = arith.mulf %37, %43 : vector<8x32xf32>
    %45 = vector.extract_strided_slice %5 {offsets = [16, 0], sizes = [8, 128], strides = [1, 1]} : vector<64x128xf32> to vector<8x128xf32>
    %cst_13 = arith.constant dense<0.000000e+00> : vector<8x128xf32>
    %46 = tpu.matmul %44, %6, %cst_13 {dimension_numbers = #tpu.dot_dimension_numbers<[1], [0], [0], [1], [0, 0, 1, 1], [], []>} : vector<8x32xf32>, vector<32x128xf32>, vector<8x128xf32> -> vector<8x128xf32>
    %47 = arith.addf %45, %46 : vector<8x128xf32>
    %48 = arith.negf %47 : vector<8x128xf32>
    %49 = math.exp %48 : vector<8x128xf32>
    %cst_14 = arith.constant 1.000000e+00 : f32
    %50 = vector.broadcast %cst_14 : f32 to vector<8x128xf32>
    %51 = arith.addf %50, %49 : vector<8x128xf32>
    %52 = arith.divf %50, %51 : vector<8x128xf32>
    %53 = vector.extract_strided_slice %52 {offsets = [0, 0], sizes = [8, 32], strides = [1, 1]} : vector<8x128xf32> to vector<8x32xf32>
    %54 = vector.extract_strided_slice %52 {offsets = [0, 32], sizes = [8, 32], strides = [1, 1]} : vector<8x128xf32> to vector<8x32xf32>
    %55 = vector.extract_strided_slice %52 {offsets = [0, 96], sizes = [8, 32], strides = [1, 1]} : vector<8x128xf32> to vector<8x32xf32>
    %56 = vector.extract_strided_slice %47 {offsets = [0, 64], sizes = [8, 32], strides = [1, 1]} : vector<8x128xf32> to vector<8x32xf32>
    %57 = math.tanh %56 : vector<8x32xf32>
    %58 = arith.mulf %54, %42 : vector<8x32xf32>
    %59 = arith.mulf %53, %57 : vector<8x32xf32>
    %60 = arith.addf %58, %59 : vector<8x32xf32>
    %61 = math.tanh %60 : vector<8x32xf32>
    %62 = arith.mulf %55, %61 : vector<8x32xf32>
    %63 = vector.extract_strided_slice %5 {offsets = [24, 0], sizes = [8, 128], strides = [1, 1]} : vector<64x128xf32> to vector<8x128xf32>
    %cst_15 = arith.constant dense<0.000000e+00> : vector<8x128xf32>
    %64 = tpu.matmul %62, %6, %cst_15 {dimension_numbers = #tpu.dot_dimension_numbers<[1], [0], [0], [1], [0, 0, 1, 1], [], []>} : vector<8x32xf32>, vector<32x128xf32>, vector<8x128xf32> -> vector<8x128xf32>
    %65 = arith.addf %63, %64 : vector<8x128xf32>
    %66 = arith.negf %65 : vector<8x128xf32>
    %67 = math.exp %66 : vector<8x128xf32>
    %cst_16 = arith.constant 1.000000e+00 : f32
    %68 = vector.broadcast %cst_16 : f32 to vector<8x128xf32>
    %69 = arith.addf %68, %67 : vector<8x128xf32>
    %70 = arith.divf %68, %69 : vector<8x128xf32>
    %71 = vector.extract_strided_slice %70 {offsets = [0, 0], sizes = [8, 32], strides = [1, 1]} : vector<8x128xf32> to vector<8x32xf32>
    %72 = vector.extract_strided_slice %70 {offsets = [0, 32], sizes = [8, 32], strides = [1, 1]} : vector<8x128xf32> to vector<8x32xf32>
    %73 = vector.extract_strided_slice %70 {offsets = [0, 96], sizes = [8, 32], strides = [1, 1]} : vector<8x128xf32> to vector<8x32xf32>
    %74 = vector.extract_strided_slice %65 {offsets = [0, 64], sizes = [8, 32], strides = [1, 1]} : vector<8x128xf32> to vector<8x32xf32>
    %75 = math.tanh %74 : vector<8x32xf32>
    %76 = arith.mulf %72, %60 : vector<8x32xf32>
    %77 = arith.mulf %71, %75 : vector<8x32xf32>
    %78 = arith.addf %76, %77 : vector<8x32xf32>
    %79 = math.tanh %78 : vector<8x32xf32>
    %80 = arith.mulf %73, %79 : vector<8x32xf32>
    %81 = vector.extract_strided_slice %5 {offsets = [32, 0], sizes = [8, 128], strides = [1, 1]} : vector<64x128xf32> to vector<8x128xf32>
    %cst_17 = arith.constant dense<0.000000e+00> : vector<8x128xf32>
    %82 = tpu.matmul %80, %6, %cst_17 {dimension_numbers = #tpu.dot_dimension_numbers<[1], [0], [0], [1], [0, 0, 1, 1], [], []>} : vector<8x32xf32>, vector<32x128xf32>, vector<8x128xf32> -> vector<8x128xf32>
    %83 = arith.addf %81, %82 : vector<8x128xf32>
    %84 = arith.negf %83 : vector<8x128xf32>
    %85 = math.exp %84 : vector<8x128xf32>
    %cst_18 = arith.constant 1.000000e+00 : f32
    %86 = vector.broadcast %cst_18 : f32 to vector<8x128xf32>
    %87 = arith.addf %86, %85 : vector<8x128xf32>
    %88 = arith.divf %86, %87 : vector<8x128xf32>
    %89 = vector.extract_strided_slice %88 {offsets = [0, 0], sizes = [8, 32], strides = [1, 1]} : vector<8x128xf32> to vector<8x32xf32>
    %90 = vector.extract_strided_slice %88 {offsets = [0, 32], sizes = [8, 32], strides = [1, 1]} : vector<8x128xf32> to vector<8x32xf32>
    %91 = vector.extract_strided_slice %88 {offsets = [0, 96], sizes = [8, 32], strides = [1, 1]} : vector<8x128xf32> to vector<8x32xf32>
    %92 = vector.extract_strided_slice %83 {offsets = [0, 64], sizes = [8, 32], strides = [1, 1]} : vector<8x128xf32> to vector<8x32xf32>
    %93 = math.tanh %92 : vector<8x32xf32>
    %94 = arith.mulf %90, %78 : vector<8x32xf32>
    %95 = arith.mulf %89, %93 : vector<8x32xf32>
    %96 = arith.addf %94, %95 : vector<8x32xf32>
    %97 = math.tanh %96 : vector<8x32xf32>
    %98 = arith.mulf %91, %97 : vector<8x32xf32>
    %99 = vector.extract_strided_slice %5 {offsets = [40, 0], sizes = [8, 128], strides = [1, 1]} : vector<64x128xf32> to vector<8x128xf32>
    %cst_19 = arith.constant dense<0.000000e+00> : vector<8x128xf32>
    %100 = tpu.matmul %98, %6, %cst_19 {dimension_numbers = #tpu.dot_dimension_numbers<[1], [0], [0], [1], [0, 0, 1, 1], [], []>} : vector<8x32xf32>, vector<32x128xf32>, vector<8x128xf32> -> vector<8x128xf32>
    %101 = arith.addf %99, %100 : vector<8x128xf32>
    %102 = arith.negf %101 : vector<8x128xf32>
    %103 = math.exp %102 : vector<8x128xf32>
    %cst_20 = arith.constant 1.000000e+00 : f32
    %104 = vector.broadcast %cst_20 : f32 to vector<8x128xf32>
    %105 = arith.addf %104, %103 : vector<8x128xf32>
    %106 = arith.divf %104, %105 : vector<8x128xf32>
    %107 = vector.extract_strided_slice %106 {offsets = [0, 0], sizes = [8, 32], strides = [1, 1]} : vector<8x128xf32> to vector<8x32xf32>
    %108 = vector.extract_strided_slice %106 {offsets = [0, 32], sizes = [8, 32], strides = [1, 1]} : vector<8x128xf32> to vector<8x32xf32>
    %109 = vector.extract_strided_slice %106 {offsets = [0, 96], sizes = [8, 32], strides = [1, 1]} : vector<8x128xf32> to vector<8x32xf32>
    %110 = vector.extract_strided_slice %101 {offsets = [0, 64], sizes = [8, 32], strides = [1, 1]} : vector<8x128xf32> to vector<8x32xf32>
    %111 = math.tanh %110 : vector<8x32xf32>
    %112 = arith.mulf %108, %96 : vector<8x32xf32>
    %113 = arith.mulf %107, %111 : vector<8x32xf32>
    %114 = arith.addf %112, %113 : vector<8x32xf32>
    %115 = math.tanh %114 : vector<8x32xf32>
    %116 = arith.mulf %109, %115 : vector<8x32xf32>
    %117 = vector.extract_strided_slice %5 {offsets = [48, 0], sizes = [8, 128], strides = [1, 1]} : vector<64x128xf32> to vector<8x128xf32>
    %cst_21 = arith.constant dense<0.000000e+00> : vector<8x128xf32>
    %118 = tpu.matmul %116, %6, %cst_21 {dimension_numbers = #tpu.dot_dimension_numbers<[1], [0], [0], [1], [0, 0, 1, 1], [], []>} : vector<8x32xf32>, vector<32x128xf32>, vector<8x128xf32> -> vector<8x128xf32>
    %119 = arith.addf %117, %118 : vector<8x128xf32>
    %120 = arith.negf %119 : vector<8x128xf32>
    %121 = math.exp %120 : vector<8x128xf32>
    %cst_22 = arith.constant 1.000000e+00 : f32
    %122 = vector.broadcast %cst_22 : f32 to vector<8x128xf32>
    %123 = arith.addf %122, %121 : vector<8x128xf32>
    %124 = arith.divf %122, %123 : vector<8x128xf32>
    %125 = vector.extract_strided_slice %124 {offsets = [0, 0], sizes = [8, 32], strides = [1, 1]} : vector<8x128xf32> to vector<8x32xf32>
    %126 = vector.extract_strided_slice %124 {offsets = [0, 32], sizes = [8, 32], strides = [1, 1]} : vector<8x128xf32> to vector<8x32xf32>
    %127 = vector.extract_strided_slice %124 {offsets = [0, 96], sizes = [8, 32], strides = [1, 1]} : vector<8x128xf32> to vector<8x32xf32>
    %128 = vector.extract_strided_slice %119 {offsets = [0, 64], sizes = [8, 32], strides = [1, 1]} : vector<8x128xf32> to vector<8x32xf32>
    %129 = math.tanh %128 : vector<8x32xf32>
    %130 = arith.mulf %126, %114 : vector<8x32xf32>
    %131 = arith.mulf %125, %129 : vector<8x32xf32>
    %132 = arith.addf %130, %131 : vector<8x32xf32>
    %133 = math.tanh %132 : vector<8x32xf32>
    %134 = arith.mulf %127, %133 : vector<8x32xf32>
    %135 = vector.extract_strided_slice %5 {offsets = [56, 0], sizes = [8, 128], strides = [1, 1]} : vector<64x128xf32> to vector<8x128xf32>
    %cst_23 = arith.constant dense<0.000000e+00> : vector<8x128xf32>
    %136 = tpu.matmul %134, %6, %cst_23 {dimension_numbers = #tpu.dot_dimension_numbers<[1], [0], [0], [1], [0, 0, 1, 1], [], []>} : vector<8x32xf32>, vector<32x128xf32>, vector<8x128xf32> -> vector<8x128xf32>
    %137 = arith.addf %135, %136 : vector<8x128xf32>
    %138 = arith.negf %137 : vector<8x128xf32>
    %139 = math.exp %138 : vector<8x128xf32>
    %cst_24 = arith.constant 1.000000e+00 : f32
    %140 = vector.broadcast %cst_24 : f32 to vector<8x128xf32>
    %141 = arith.addf %140, %139 : vector<8x128xf32>
    %142 = arith.divf %140, %141 : vector<8x128xf32>
    %143 = vector.extract_strided_slice %142 {offsets = [0, 0], sizes = [8, 32], strides = [1, 1]} : vector<8x128xf32> to vector<8x32xf32>
    %144 = vector.extract_strided_slice %142 {offsets = [0, 32], sizes = [8, 32], strides = [1, 1]} : vector<8x128xf32> to vector<8x32xf32>
    %145 = vector.extract_strided_slice %142 {offsets = [0, 96], sizes = [8, 32], strides = [1, 1]} : vector<8x128xf32> to vector<8x32xf32>
    %146 = vector.extract_strided_slice %137 {offsets = [0, 64], sizes = [8, 32], strides = [1, 1]} : vector<8x128xf32> to vector<8x32xf32>
    %147 = math.tanh %146 : vector<8x32xf32>
    %148 = arith.mulf %144, %132 : vector<8x32xf32>
    %149 = arith.mulf %143, %147 : vector<8x32xf32>
    %150 = arith.addf %148, %149 : vector<8x32xf32>
    %151 = math.tanh %150 : vector<8x32xf32>
    %152 = arith.mulf %145, %151 : vector<8x32xf32>
    %c0_25 = arith.constant 0 : index
    %c0_26 = arith.constant 0 : index
    %153 = vector.load %arg5[%c0_25, %c0_26] : memref<8x32xf32, #tpu.memory_space<vmem>>, vector<8x32xf32>
    tpu.vector_store %arg5[%c0_25, %c0_26], %152 {strides = array<i32>} : memref<8x32xf32, #tpu.memory_space<vmem>>, vector<8x32xf32>,
    return
  }
  func.func @transform_0(%arg0: i32) -> (i32, i32) {
    %c0_i32 = arith.constant 0 : i32
    %c0_i32_0 = arith.constant 0 : i32
    %c0_i32_1 = arith.constant 0 : i32
    return %c0_i32, %c0_i32_0 : i32, i32
  }
  func.func @transform_1(%arg0: i32) -> (i32, i32) {
    %c0_i32 = arith.constant 0 : i32
    %c0_i32_0 = arith.constant 0 : i32
    %c0_i32_1 = arith.constant 0 : i32
    return %c0_i32, %c0_i32_0 : i32, i32
  }
  func.func @transform_2(%arg0: i32) -> (i32, i32) {
    %c0_i32 = arith.constant 0 : i32
    %c0_i32_0 = arith.constant 0 : i32
    %c0_i32_1 = arith.constant 0 : i32
    return %c0_i32, %c0_i32_0 : i32, i32
  }
  func.func @transform_3(%arg0: i32) -> (i32, i32) {
    %c0_i32 = arith.constant 0 : i32
    %c0_i32_0 = arith.constant 0 : i32
    %c0_i32_1 = arith.constant 0 : i32
    return %c0_i32, %c0_i32_0 : i32, i32
  }
  func.func @transform_4(%arg0: i32) -> (i32, i32) {
    %c0_i32 = arith.constant 0 : i32
    %c0_i32_0 = arith.constant 0 : i32
    %c0_i32_1 = arith.constant 0 : i32
    return %c0_i32, %c0_i32_0 : i32, i32
  }
}

</mosaic_0001>

<bundles_post_ra>
// kernel: net_forward.1
= control target key start
LH: loop header
LB: loop body
LE: loop exit
PB: predicated region body
PF: predicated region fallthrough
CT: control target
= control target key end

     0   :  { %v1288_v2 = vmov 0.0|0.0   ;;  %vm36_vm0 = vcmask 261120   ;;  %vm1289_vm1 = vmmov 0   ;;  %v1290_v4 = vmov 0.0   ;;  %s1292_s9 = smov 64   ;;  %s1496_s1 = inlined_call_operand.vmem [shape: f32[32,128], index: 1, kind: input, shape index: {}]   ;;  %s1497_s2 = inlined_call_operand.vmem [shape: f32[32,128], index: 2, kind: input, shape index: {}]   ;;  %s1498_s0 = inlined_call_operand.vmem [shape: f32[64,32], index: 0, kind: input, shape index: {}]   ;;  %s1499_s3 = inlined_call_operand.vmem [shape: f32[1,128], index: 3, kind: input, shape index: {}]   ;;  %s1500_s4 = inlined_call_operand.vmem [shape: f32[8,32], index: 4, kind: output, shape index: {}]  }
   0x1   :  { %v25_v0 = vld [vmem:[%s1496_s1] sm:$0xff]  ;;  %v26_v1 = vld [vmem:[%s1496_s1 + $0x8] sm:$0xff]  ;;  %1170 = vmatprep.subr.bf16.mxu1 %v1288_v2  ;;  %1082 = vmatprep.mubr.msk.f32.mxu1 %vm1289_vm1, %v1290_v4  ;;  %v27_v7 = vld [vmem:[%s1496_s1 + $0x10] sm:$0xff]  ;;  %v1291_v16 = vmov 0.5  }
   0x2   :  { %v166_v3 = vld [vmem:[%s1497_s2] sm:$0xff]  ;;  %v1162_v5 = vpack.c.bf16 %v26_v1, %v25_v0  ;;  %v167_v6 = vld [vmem:[%s1497_s2 + $0x8] sm:$0xff]  ;;  %v28_v8 = vld [vmem:[%s1496_s1 + $0x18] sm:$0xff] }
   0x3   :  { %v1340_v9 = vpack.c.bf16 %v167_v6, %v166_v3  ;;  %v1166_v10 = vpack.c.bf16 %v28_v8, %v27_v7  ;;  %v17_v11 = vld [vmem:[%s1498_s0] sm:$0xff]  ;;  %v168_v12 = vld [vmem:[%s1497_s2 + $0x10] sm:$0xff]  ;;  %v169_v13 = vld [vmem:[%s1497_s2 + $0x18] sm:$0xff] }
   0x4   :  { %1163 = vmatprep.subr.bf16.mxu0 %v1162_v5  ;;  %1062 = vmatprep.mubr.msk.f32.mxu0 %vm36_vm0, %v17_v11  ;;  %v1353_v14 = vpack.c.bf16 %v169_v13, %v168_v12  ;;  %v18_v15 = vld [vmem:[%s1498_s0 + $0x8] sm:$0xff]  ;;  %v1377_v17 = vld [vmem:[%s1499_s3] ss:$0 sm:$0xff]  ;;  %s1293_s3 = smov 32   ;;  %v19_v52 = vld [vmem:[%s1498_s0 + $0x10] sm:$0xff] }
   0x5   :  { %1165 = vmatpush3.bf16.msra.mxu0 %v1162_v5  ;;  %1172 = vmatpush3.bf16.msra.mxu1 %v1340_v9  ;;  %v20_v53 = vld [vmem:[%s1498_s0 + $0x18] sm:$0xff]  ;;  %v21_v54 = vld [vmem:[%s1498_s0 + $0x20] sm:$0xff]  ;;  %v22_v55 = vld [vmem:[%s1498_s0 + $0x28] sm:$0xff] }
   0x6   :  { %1167 = vmatprep.subr.bf16.mxu0 %v1166_v10  ;;  %1173 = vmatprep.subr.bf16.mxu1 %v1288_v2  ;;  %v23_v56 = vld [vmem:[%s1498_s0 + $0x30] sm:$0xff]  ;;  %v24_v57 = vld [vmem:[%s1498_s0 + $0x38] sm:$0xff] }
   0x9   :  { %1169 = vmatpush3.bf16.msra.mxu0 %v1166_v10  ;;  %1175 = vmatpush3.bf16.msra.mxu1 %v1353_v14 }
   0xa   :  { %1176 = vmatprep.subr.bf16.mxu1 %v1288_v2  ;;  %1182 = vmatprep.subr.bf16.mxu0 %v1288_v2 }
   0xc   :  { %1063 = vmatmul.mubr.msk.f32.vlgmr.msra.gmra.mrb[0].mxu0 %vm36_vm0, %v18_v15  ;;  %1083 = vmatmul.mubr.msk.f32.vlgmr.msra.gmra.mrb[0].mxu1 %vm36_vm0, %v1291_v16 }
   0xd   :  { %1178 = vmatpush3.bf16.msra.mxu1 %v1340_v9  ;;  %1093 = vmatprep.mubr.msk.f32.mxu1 %vm1289_vm1, %v1290_v4 }
   0xe   :  { %1179 = vmatprep.subr.bf16.mxu1 %v1288_v2  ;;  %1184 = vmatpush3.bf16.msra.mxu0 %v1340_v9 }
   0xf   :  { %1185 = vmatprep.subr.bf16.mxu0 %v1288_v2  ;;  %1065 = vmatprep.mubr.msk.f32.mxu0 %vm36_vm0, %v19_v52 }
  0x10   :  { %1066 = vmatmul.mubr.msk.f32.gmra.mrb[2].mxu0 %vm36_vm0, %v20_v53 }
  0x11   :  { %1181 = vmatpush3.bf16.msra.mxu1 %v1353_v14  ;;  %1068 = vmatprep.mubr.msk.f32.mxu0 %vm36_vm0, %v21_v54 }
  0x12   :  { %1187 = vmatpush3.bf16.msra.mxu0 %v1353_v14  ;;  %1188 = vmatprep.subr.bf16.mxu1 %v1288_v2 }
  0x13   :  { %1194 = vmatprep.subr.bf16.mxu0 %v1288_v2 }
  0x14   :  { %1069 = vmatmul.mubr.msk.f32.gmra.mrb[4].mxu0 %vm36_vm0, %v22_v55 }
  0x15   :  { %1071 = vmatprep.mubr.msk.f32.mxu0 %vm36_vm0, %v23_v56 }
  0x18   :  { %1072 = vmatmul.mubr.msk.f32.gmra.mrb[6].mxu0 %vm36_vm0, %v24_v57 }
  0x19   :  { %1104 = vmatprep.mubr.msk.f32.mxu0 %vm1289_vm1, %v1290_v4 }
  0xdf   :  { %v1064_v18 = vpop.f32.mrb[0].mxu0  ;;  %v239_v19 = vpop.f32.mrb[0].mxu1 }
  0xe0   :  { %v127_v20 = vpop.f32.mrb[1].mxu0  ;;  %v1084_v21 = vpop.f32.mrb[1].mxu1  ;;  %v133_v38 = vadd.f32 %v1064_v18, %v1377_v17 }
  0xe1   :  { %v128_v22 = vadd.f32 %v1377_v17, %v127_v20 }
  0xe3   :  { %v243_v23 = vadd.f32 %v239_v19, %v128_v22  ;;  %v1067_v61 = vpop.f32.mrb[2].mxu0 }
  0xe4   :  { %v137_v62 = vpop.f32.mrb[3].mxu0 }
  0xe5   :  { %1224 = vtanh.f32 %v243_v23  ;;  %v987_v25 = vmul.f32 -1.442695, %v243_v23  ;;  %v138_v6 = vadd.f32 %v1377_v17, %v137_v62 }
  0xe7   :  { %1226 = vpow2.f32 %v987_v25  ;;  %v1422_v63 = vpop.f32.mrb[4].mxu0 }
  0xe8   :  { %v1424_v0 = vpop.f32.mrb[5].mxu0 }
  0xeb   :  { %v1426_v1 = vpop.f32.mrb[6].mxu0 }
  0xec   :  { %v1428_v3 = vpop.f32.mrb[7].mxu0 }
  0xef   :  { %v1225_v24 = vpop.eup %1224 }
  0xf0   :  { %253 = vrot.lane.b32.xlu0 %v1225_v24, %s1292_s9 }
  0xf1   :  { %v1227_v26 = vpop.eup %1226 }
  0xf2   :  { %v247_v27 = vadd.f32 1.0, %v1227_v26 }
  0xf4   :  { %1228 = vrcp.f32 %v247_v27  ;;  %v143_v27 = vadd.f32 %v1067_v61, %v1377_v17 }
  0xfe   :  { %v1229_v28 = vpop.eup %1228 }
  0xff   :  { %v251_v31 = vmul.f32 0.5, %v1229_v28 }
 0x162   :  { %v254_v29 = vpop.permute.xlu0 %253 }
 0x163   :  { %v256_v30 = vmul.f32 %v1229_v28, %v254_v29 }
 0x165   :  { %258 = vrot.lane.b32.xlu0 %v256_v30, %s1293_s3 }
 0x1d7   :  { %v259_v32 = vpop.permute.xlu0 %258 }
 0x1d8   :  { %v261_v33 = vadd.f32 %v259_v32, %v251_v31 }
 0x1da   :  { %1230 = vtanh.f32 %v261_v33 }
 0x1e4   :  { %v1231_v34 = vpop.eup %1230 }
 0x1e5   :  { %264 = vrot.lane.b32.xlu1 %v1231_v34, %s1292_s9 }
 0x257   :  { %v265_v35 = vpop.permute.xlu1 %264 }
 0x258   :  { %v267_v36 = vmul.f32 %v1229_v28, %v265_v35 }
 0x25a   :  { %269 = vrot.lane.b32.xlu1 %v267_v36, %s1293_s3 }
 0x2cc   :  { %v270_v37 = vpop.permute.xlu1 %269 }
 0x2cd   :  { %1094 = vmatmul.mubr.msk.f32.vlgmr.msra.gmra.mrb[2].mxu1 %vm36_vm0, %v270_v37 }
 0x2ce   :  { %1190 = vmatpush3.bf16.msra.mxu1 %v1340_v9  ;;  %1115 = vmatprep.mubr.msk.f32.mxu1 %vm1289_vm1, %v1290_v4 }
 0x2cf   :  { %1191 = vmatprep.subr.bf16.mxu1 %v1288_v2 }
 0x2d2   :  { %1193 = vmatpush3.bf16.msra.mxu1 %v1353_v14 }
 0x2d3   :  { %1200 = vmatprep.subr.bf16.mxu1 %v1288_v2 }
 0x3a0   :  { %v339_v39 = vpop.f32.mrb[2].mxu1 }
 0x3a1   :  { %v343_v40 = vadd.f32 %v339_v39, %v133_v38  ;;  %v1095_v41 = vpop.f32.mrb[3].mxu1 }
 0x3a3   :  { %1232 = vtanh.f32 %v343_v40  ;;  %v989_v43 = vmul.f32 -1.442695, %v343_v40 }
 0x3a5   :  { %1234 = vpow2.f32 %v989_v43 }
 0x3ad   :  { %v1233_v42 = vpop.eup %1232 }
 0x3ae   :  { %353 = vrot.lane.b32.xlu0 %v1233_v42, %s1292_s9 }
 0x3af   :  { %v1235_v44 = vpop.eup %1234 }
 0x3b0   :  { %v347_v45 = vadd.f32 1.0, %v1235_v44 }
 0x3b2   :  { %1236 = vrcp.f32 %v347_v45  ;;  %v148_v45 = vadd.f32 %v1377_v17, %v1424_v0  ;;  %v153_v0 = vadd.f32 %v1422_v63, %v1377_v17 }
 0x3bc   :  { %v1237_v46 = vpop.eup %1236 }
 0x3bd   :  { %v351_v49 = vmul.f32 %v1237_v46, %v261_v33 }
 0x420   :  { %v354_v47 = vpop.permute.xlu0 %353 }
 0x421   :  { %v356_v48 = vmul.f32 %v1237_v46, %v354_v47 }
 0x423   :  { %358 = vrot.lane.b32.xlu1 %v356_v48, %s1293_s3 }
 0x495   :  { %v359_v50 = vpop.permute.xlu1 %358 }
 0x496   :  { %v361_v51 = vadd.f32 %v359_v50, %v351_v49 }
 0x498   :  { %1238 = vtanh.f32 %v361_v51 }
 0x4a2   :  { %v1239_v58 = vpop.eup %1238 }
 0x4a3   :  { %364 = vrot.lane.b32.xlu0 %v1239_v58, %s1292_s9 }
 0x515   :  { %v365_v59 = vpop.permute.xlu0 %364 }
 0x516   :  { %v367_v60 = vmul.f32 %v1237_v46, %v365_v59 }
 0x518   :  { %369 = vrot.lane.b32.xlu1 %v367_v60, %s1293_s3 }
 0x58a   :  { %v370_v5 = vpop.permute.xlu1 %369 }
 0x58b   :  { %1105 = vmatmul.mubr.msk.f32.vlgmr.msra.gmra.mrb[8].mxu0 %vm36_vm0, %v370_v5 }
 0x58c   :  { %1196 = vmatpush3.bf16.msra.mxu0 %v1340_v9  ;;  %1126 = vmatprep.mubr.msk.f32.mxu0 %vm1289_vm1, %v1290_v4 }
 0x58d   :  { %1197 = vmatprep.subr.bf16.mxu0 %v1288_v2 }
 0x590   :  { %1199 = vmatpush3.bf16.msra.mxu0 %v1353_v14 }
 0x591   :  { %1206 = vmatprep.subr.bf16.mxu0 %v1288_v2 }
 0x65e   :  { %v439_v7 = vpop.f32.mrb[8].mxu0 }
 0x65f   :  { %v443_v8 = vadd.f32 %v439_v7, %v138_v6  ;;  %v1106_v10 = vpop.f32.mrb[9].mxu0 }
 0x661   :  { %1240 = vtanh.f32 %v443_v8  ;;  %v991_v12 = vmul.f32 -1.442695, %v443_v8 }
 0x663   :  { %1242 = vpow2.f32 %v991_v12 }
 0x66b   :  { %v1241_v11 = vpop.eup %1240 }
 0x66c   :  { %453 = vrot.lane.b32.xlu0 %v1241_v11, %s1292_s9 }
 0x66d   :  { %v1243_v13 = vpop.eup %1242 }
 0x66e   :  { %v447_v15 = vadd.f32 1.0, %v1243_v13 }
 0x670   :  { %1244 = vrcp.f32 %v447_v15 }
 0x67a   :  { %v1245_v16 = vpop.eup %1244 }
 0x67b   :  { %v451_v20 = vmul.f32 %v1245_v16, %v361_v51 }
 0x6de   :  { %v454_v18 = vpop.permute.xlu0 %453 }
 0x6df   :  { %v456_v19 = vmul.f32 %v1245_v16, %v454_v18 }
 0x6e1   :  { %458 = vrot.lane.b32.xlu1 %v456_v19, %s1293_s3 }
 0x753   :  { %v459_v21 = vpop.permute.xlu1 %458 }
 0x754   :  { %v461_v22 = vadd.f32 %v459_v21, %v451_v20  ;;  %v158_v20 = vadd.f32 %v1377_v17, %v1428_v3 }
 0x756   :  { %1246 = vtanh.f32 %v461_v22 }
 0x760   :  { %v1247_v23 = vpop.eup %1246 }
 0x761   :  { %464 = vrot.lane.b32.xlu0 %v1247_v23, %s1292_s9 }
 0x7d3   :  { %v465_v24 = vpop.permute.xlu0 %464 }
 0x7d4   :  { %v467_v25 = vmul.f32 %v1245_v16, %v465_v24 }
 0x7d6   :  { %469 = vrot.lane.b32.xlu1 %v467_v25, %s1293_s3 }
 0x848   :  { %v470_v26 = vpop.permute.xlu1 %469 }
 0x849   :  { %1116 = vmatmul.mubr.msk.f32.vlgmr.msra.gmra.mrb[4].mxu1 %vm36_vm0, %v470_v26 }
 0x84a   :  { %1202 = vmatpush3.bf16.msra.mxu1 %v1340_v9  ;;  %1137 = vmatprep.mubr.msk.f32.mxu1 %vm1289_vm1, %v1290_v4 }
 0x84b   :  { %1203 = vmatprep.subr.bf16.mxu1 %v1288_v2 }
 0x84e   :  { %1205 = vmatpush3.bf16.msra.mxu1 %v1353_v14 }
 0x84f   :  { %1212 = vmatprep.subr.bf16.mxu1 %v1288_v2 }
 0x91c   :  { %v539_v28 = vpop.f32.mrb[4].mxu1 }
 0x91d   :  { %v543_v29 = vadd.f32 %v539_v28, %v143_v27  ;;  %v1117_v30 = vpop.f32.mrb[5].mxu1 }
 0x91f   :  { %1248 = vtanh.f32 %v543_v29  ;;  %v993_v32 = vmul.f32 -1.442695, %v543_v29 }
 0x921   :  { %1250 = vpow2.f32 %v993_v32 }
 0x929   :  { %v1249_v31 = vpop.eup %1248 }
 0x92a   :  { %553 = vrot.lane.b32.xlu0 %v1249_v31, %s1292_s9 }
 0x92b   :  { %v1251_v33 = vpop.eup %1250 }
 0x92c   :  { %v547_v34 = vadd.f32 1.0, %v1251_v33 }
 0x92e   :  { %1252 = vrcp.f32 %v547_v34 }
 0x938   :  { %v1253_v35 = vpop.eup %1252 }
 0x939   :  { %v551_v38 = vmul.f32 %v1253_v35, %v461_v22 }
 0x99c   :  { %v554_v36 = vpop.permute.xlu0 %553 }
 0x99d   :  { %v556_v37 = vmul.f32 %v1253_v35, %v554_v36 }
 0x99f   :  { %558 = vrot.lane.b32.xlu1 %v556_v37, %s1293_s3  ;;  %v163_v37 = vadd.f32 %v1426_v1, %v1377_v17 }
 0xa11   :  { %v559_v39 = vpop.permute.xlu1 %558 }
 0xa12   :  { %v561_v40 = vadd.f32 %v559_v39, %v551_v38 }
 0xa14   :  { %1254 = vtanh.f32 %v561_v40 }
 0xa1e   :  { %v1255_v41 = vpop.eup %1254 }
 0xa1f   :  { %564 = vrot.lane.b32.xlu0 %v1255_v41, %s1292_s9 }
 0xa91   :  { %v565_v42 = vpop.permute.xlu0 %564 }
 0xa92   :  { %v567_v43 = vmul.f32 %v1253_v35, %v565_v42 }
 0xa94   :  { %569 = vrot.lane.b32.xlu1 %v567_v43, %s1293_s3 }
 0xb06   :  { %v570_v44 = vpop.permute.xlu1 %569 }
 0xb07   :  { %1127 = vmatmul.mubr.msk.f32.vlgmr.msra.gmra.mrb[10].mxu0 %vm36_vm0, %v570_v44 }
 0xb08   :  { %1208 = vmatpush3.bf16.msra.mxu0 %v1340_v9  ;;  %1148 = vmatprep.mubr.msk.f32.mxu0 %vm1289_vm1, %v1290_v4 }
 0xb09   :  { %1209 = vmatprep.subr.bf16.mxu0 %v1288_v2 }
 0xb0c   :  { %1211 = vmatpush3.bf16.msra.mxu0 %v1353_v14 }
 0xbda   :  { %v639_v46 = vpop.f32.mrb[10].mxu0 }
 0xbdb   :  { %v643_v47 = vadd.f32 %v639_v46, %v148_v45  ;;  %v1128_v48 = vpop.f32.mrb[11].mxu0 }
 0xbdd   :  { %1256 = vtanh.f32 %v643_v47  ;;  %v995_v50 = vmul.f32 -1.442695, %v643_v47 }
 0xbdf   :  { %1258 = vpow2.f32 %v995_v50 }
 0xbe7   :  { %v1257_v49 = vpop.eup %1256 }
 0xbe8   :  { %653 = vrot.lane.b32.xlu0 %v1257_v49, %s1292_s9 }
 0xbe9   :  { %v1259_v51 = vpop.eup %1258 }
 0xbea   :  { %v647_v52 = vadd.f32 1.0, %v1259_v51 }
 0xbec   :  { %1260 = vrcp.f32 %v647_v52 }
 0xbf6   :  { %v1261_v53 = vpop.eup %1260 }
 0xbf7   :  { %v651_v56 = vmul.f32 %v1261_v53, %v561_v40 }
 0xc5a   :  { %v654_v54 = vpop.permute.xlu0 %653 }
 0xc5b   :  { %v656_v55 = vmul.f32 %v1261_v53, %v654_v54 }
 0xc5d   :  { %658 = vrot.lane.b32.xlu1 %v656_v55, %s1293_s3 }
 0xccf   :  { %v659_v57 = vpop.permute.xlu1 %658 }
 0xcd0   :  { %v661_v58 = vadd.f32 %v659_v57, %v651_v56 }
 0xcd2   :  { %1262 = vtanh.f32 %v661_v58 }
 0xcdc   :  { %v1263_v59 = vpop.eup %1262 }
 0xcdd   :  { %664 = vrot.lane.b32.xlu0 %v1263_v59, %s1292_s9 }
 0xd4f   :  { %v665_v60 = vpop.permute.xlu0 %664 }
 0xd50   :  { %v667_v61 = vmul.f32 %v1261_v53, %v665_v60 }
 0xd52   :  { %669 = vrot.lane.b32.xlu1 %v667_v61, %s1293_s3 }
 0xdc4   :  { %v670_v62 = vpop.permute.xlu1 %669 }
 0xdc5   :  { %1138 = vmatmul.mubr.msk.f32.vlgmr.msra.gmra.mrb[6].mxu1 %vm36_vm0, %v670_v62 }
 0xdc6   :  { %1214 = vmatpush3.bf16.msra.mxu1 %v1340_v9  ;;  %1159 = vmatprep.mubr.msk.f32.mxu1 %vm1289_vm1, %v1290_v4 }
 0xdc7   :  { %1215 = vmatprep.subr.bf16.mxu1 %v1288_v2 }
 0xdca   :  { %1217 = vmatpush3.bf16.msra.mxu1 %v1353_v14 }
 0xe98   :  { %v739_v5 = vpop.f32.mrb[6].mxu1 }
 0xe99   :  { %v743_v6 = vadd.f32 %v739_v5, %v153_v0  ;;  %v1139_v7 = vpop.f32.mrb[7].mxu1 }
 0xe9b   :  { %1264 = vtanh.f32 %v743_v6  ;;  %v997_v10 = vmul.f32 -1.442695, %v743_v6 }
 0xe9d   :  { %1266 = vpow2.f32 %v997_v10 }
 0xea5   :  { %v1265_v8 = vpop.eup %1264 }
 0xea6   :  { %753 = vrot.lane.b32.xlu0 %v1265_v8, %s1292_s9 }
 0xea7   :  { %v1267_v9 = vpop.eup %1266 }
 0xea8   :  { %v747_v11 = vadd.f32 1.0, %v1267_v9 }
 0xeaa   :  { %1268 = vrcp.f32 %v747_v11 }
 0xeb4   :  { %v1269_v4 = vpop.eup %1268 }
 0xeb5   :  { %v751_v14 = vmul.f32 %v1269_v4, %v661_v58 }
 0xf18   :  { %v754_v12 = vpop.permute.xlu0 %753 }
 0xf19   :  { %v756_v2 = vmul.f32 %v1269_v4, %v754_v12 }
 0xf1b   :  { %758 = vrot.lane.b32.xlu1 %v756_v2, %s1293_s3 }
 0xf8d   :  { %v759_v13 = vpop.permute.xlu1 %758 }
 0xf8e   :  { %v761_v63 = vadd.f32 %v759_v13, %v751_v14 }
 0xf90   :  { %1270 = vtanh.f32 %v761_v63 }
 0xf9a   :  { %v1271_v15 = vpop.eup %1270 }
 0xf9b   :  { %764 = vrot.lane.b32.xlu0 %v1271_v15, %s1292_s9 }
0x100d   :  { %v765_v16 = vpop.permute.xlu0 %764 }
0x100e   :  { %v767_v18 = vmul.f32 %v1269_v4, %v765_v16 }
0x1010   :  { %769 = vrot.lane.b32.xlu1 %v767_v18, %s1293_s3 }
0x1082   :  { %v770_v19 = vpop.permute.xlu1 %769 }
0x1083   :  { %1149 = vmatmul.mubr.msk.f32.vlgmr.msra.gmra.mrb[12].mxu0 %vm36_vm0, %v770_v19 }
0x1156   :  { %v839_v21 = vpop.f32.mrb[12].mxu0 }
0x1157   :  { %v843_v22 = vadd.f32 %v839_v21, %v158_v20  ;;  %v1150_v23 = vpop.f32.mrb[13].mxu0 }
0x1159   :  { %1272 = vtanh.f32 %v843_v22  ;;  %v999_v25 = vmul.f32 -1.442695, %v843_v22 }
0x115b   :  { %1274 = vpow2.f32 %v999_v25 }
0x1163   :  { %v1273_v24 = vpop.eup %1272 }
0x1164   :  { %853 = vrot.lane.b32.xlu0 %v1273_v24, %s1292_s9 }
0x1165   :  { %v1275_v26 = vpop.eup %1274 }
0x1166   :  { %v847_v27 = vadd.f32 1.0, %v1275_v26 }
0x1168   :  { %1276 = vrcp.f32 %v847_v27 }
0x1172   :  { %v1277_v28 = vpop.eup %1276 }
0x1173   :  { %v851_v31 = vmul.f32 %v1277_v28, %v761_v63 }
0x11d6   :  { %v854_v29 = vpop.permute.xlu0 %853 }
0x11d7   :  { %v856_v30 = vmul.f32 %v1277_v28, %v854_v29 }
0x11d9   :  { %858 = vrot.lane.b32.xlu1 %v856_v30, %s1293_s3 }
0x124b   :  { %v859_v32 = vpop.permute.xlu1 %858 }
0x124c   :  { %v861_v3 = vadd.f32 %v859_v32, %v851_v31 }
0x124e   :  { %1278 = vtanh.f32 %v861_v3 }
0x1258   :  { %v1279_v33 = vpop.eup %1278 }
0x1259   :  { %864 = vrot.lane.b32.xlu0 %v1279_v33, %s1292_s9 }
0x12cb   :  { %v865_v34 = vpop.permute.xlu0 %864 }
0x12cc   :  { %v867_v35 = vmul.f32 %v1277_v28, %v865_v34 }
0x12ce   :  { %869 = vrot.lane.b32.xlu1 %v867_v35, %s1293_s3 }
0x1340   :  { %v870_v36 = vpop.permute.xlu1 %869 }
0x1341   :  { %1160 = vmatmul.mubr.msk.f32.vlgmr.msra.gmra.mrb[8].mxu1 %vm36_vm0, %v870_v36 }
0x1414   :  { %v939_v38 = vpop.f32.mrb[8].mxu1 }
0x1415   :  { %v943_v39 = vadd.f32 %v939_v38, %v163_v37  ;;  %v1161_v40 = vpop.f32.mrb[9].mxu1 }
0x1417   :  { %1280 = vtanh.f32 %v943_v39  ;;  %v1001_v42 = vmul.f32 -1.442695, %v943_v39 }
0x1419   :  { %1282 = vpow2.f32 %v1001_v42 }
0x1421   :  { %v1281_v41 = vpop.eup %1280 }
0x1422   :  { %953 = vrot.lane.b32.xlu0 %v1281_v41, %s1292_s9 }
0x1423   :  { %v1283_v43 = vpop.eup %1282 }
0x1424   :  { %v947_v44 = vadd.f32 1.0, %v1283_v43 }
0x1426   :  { %1284 = vrcp.f32 %v947_v44 }
0x1430   :  { %v1285_v45 = vpop.eup %1284 }
0x1431   :  { %v951_v48 = vmul.f32 %v1285_v45, %v861_v3 }
0x1494   :  { %v954_v46 = vpop.permute.xlu0 %953 }
0x1495   :  { %v956_v47 = vmul.f32 %v1285_v45, %v954_v46 }
0x1497   :  { %958 = vrot.lane.b32.xlu1 %v956_v47, %s1293_s3 }
0x1509   :  { %v959_v49 = vpop.permute.xlu1 %958 }
0x150a   :  { %v961_v17 = vadd.f32 %v959_v49, %v951_v48 }
0x150c   :  { %1286 = vtanh.f32 %v961_v17 }
0x1516   :  { %v1287_v1 = vpop.eup %1286 }
0x1517   :  { %964 = vrot.lane.b32.xlu0 %v1287_v1, %s1292_s9 }
0x1589   :  { %v965_v50 = vpop.permute.xlu0 %964 }
0x158a   :  { %v967_v51 = vmul.f32 %v1285_v45, %v965_v50 }
0x158c   :  { %969 = vrot.lane.b32.xlu1 %v967_v51, %s1293_s3 }
0x15fe   :  { %v970_v52 = vpop.permute.xlu1 %969 }
0x15ff   :  { %972 = vst.msk [vmem:[%s1500_s4] sm:$0xff] %vm36_vm0, %v970_v52 }

</bundles_post_ra>
